<compile_context>
chip_gen: v7x
topology: tpu7x:2x2x1
jax: 0.10.0
libtpu: 0.0.40
codegen_flags: <defaults>
</compile_context>

<pallas_src>
import jax
import jax.numpy as jnp
from jax import lax
from jax.experimental import pallas as pl
from jax.experimental.pallas import tpu as pltpu

LN_EPS = 1e-8  # matches nn.LayerNorm(hidden_size, eps=1e-08)


def _round_up(x, m):
    return ((x + m - 1) // m) * m


def _add_layernorm(gbuf, pos_ref, gamma_ref, beta_ref, out_ref):
    """emb = gathered + pos; LayerNorm over last dim; write (1, TS, H) output tile."""
    emb = gbuf[...] + pos_ref[...]                              # (TS, H), VPU
    mean = jnp.mean(emb, axis=-1, keepdims=True)                # XLU reduce
    centered = emb - mean
    var = jnp.mean(centered * centered, axis=-1, keepdims=True)
    normed = centered * lax.rsqrt(var + LN_EPS)                 # rsqrt -> EUP
    out_ref[0] = (normed * gamma_ref[...] + beta_ref[...]).astype(out_ref.dtype)
    # Dropout p=0.0 -> identity.


def _embed_ln_kernel_resident(tok_ref, wtab_ref, pos_ref, gamma_ref, beta_ref,
                              out_ref, gbuf):
    # tok_ref:   (B, S_pad) int32 SMEM (scalar prefetch)
    # wtab_ref:  (V, H) f32 VMEM  (full word table, fetched once)
    # pos_ref:   (TS, H) f32 VMEM
    # gamma_ref: (1, H)  f32 VMEM
    # beta_ref:  (1, H)  f32 VMEM
    # out_ref:   (1, TS, H) f32 VMEM
    # gbuf:      (TS, H) f32 VMEM scratch (gathered word rows)
    TS = gbuf.shape[0]
    V = wtab_ref.shape[0]
    s0 = pl.program_id(0) * TS
    b = pl.program_id(1)

    def gather_row(i, carry):
        tok = jnp.clip(tok_ref[b, s0 + i], 0, V - 1)            # OOB guard
        gbuf[pl.ds(i, 1), :] = wtab_ref[pl.ds(tok, 1), :]       # in-VMEM gather, no DMA
        return carry

    lax.fori_loop(0, TS, gather_row, 0, unroll=min(TS, 8))

    _add_layernorm(gbuf, pos_ref, gamma_ref, beta_ref, out_ref)


def _embed_ln_kernel_hbm(tok_ref, wtab_hbm, pos_ref, gamma_ref, beta_ref,
                         out_ref, gbuf, sem):
    # Same as above but the word table stays in HBM (memory_space=pl.ANY) and rows are
    # gathered with per-row DMAs, all in flight before a single aggregate wait.
    TS, H = gbuf.shape
    V = wtab_hbm.shape[0]
    s0 = pl.program_id(0) * TS
    b = pl.program_id(1)

    def issue_row(i, carry):
        tok = jnp.clip(tok_ref[b, s0 + i], 0, V - 1)            # OOB guard
        pltpu.make_async_copy(wtab_hbm.at[pl.ds(tok, 1), :],
                              gbuf.at[pl.ds(i, 1), :],
                              sem).start()
        return carry

    lax.fori_loop(0, TS, issue_row, 0, unroll=min(TS, 8))

    # One aggregate wait: descriptor spans (TS, H) f32 == the exact total bytes of the TS
    # row copies issued above onto the same semaphore (TS <= V holds on this path; the
    # wrapper asserts it).
    pltpu.make_async_copy(wtab_hbm.at[pl.ds(0, TS), :], gbuf, sem).wait()

    _add_layernorm(gbuf, pos_ref, gamma_ref, beta_ref, out_ref)


def word_and_positional_embedding(tokens, word_table, pos_table, gamma, beta, *,
                                  max_rows_per_tile=256,
                                  resident_table_max_bytes=12 * 1024 * 1024):
    """tokens (B, S) int -> (B, S, H) f32: LayerNorm(words[tokens] + positions[arange(S)])."""
    B, S = tokens.shape
    V, H = word_table.shape
    assert S <= pos_table.shape[0], "sequence longer than max_caption_length"

    max_rows_per_tile = max(8, (max_rows_per_tile // 8) * 8)
    TS = min(max_rows_per_tile, _round_up(S, 8))                # seq-tile rows, multiple of 8
    S_pad = _round_up(S, TS)

    tok = tokens.astype(jnp.int32)
    pos = pos_table[:S].astype(jnp.float32)
    if S_pad != S:
        tok = jnp.pad(tok, ((0, 0), (0, S_pad - S)))            # pad ids with 0 (valid row)
        pos = jnp.pad(pos, ((0, S_pad - S), (0, 0)))
    wtab = word_table.astype(jnp.float32)
    gamma2 = gamma.reshape(1, H).astype(jnp.float32)
    beta2 = beta.reshape(1, H).astype(jnp.float32)

    table_bytes = V * H * 4
    tile_bytes = TS * H * 4
    resident = table_bytes <= resident_table_max_bytes

    # Grid: seq-tiles outer, batch inner -> positional block index is constant across the
    # inner (batch) steps, so the pipeline skips re-fetching it.
    grid = (S_pad // TS, B)

    pos_spec = pl.BlockSpec((TS, H), lambda s, b, tok_ref: (s, 0))
    gamma_spec = pl.BlockSpec((1, H), lambda s, b, tok_ref: (0, 0))
    beta_spec = pl.BlockSpec((1, H), lambda s, b, tok_ref: (0, 0))
    out_spec = pl.BlockSpec((1, TS, H), lambda s, b, tok_ref: (b, s, 0))

    if resident:
        kernel = _embed_ln_kernel_resident
        wtab_spec = pl.BlockSpec((V, H), lambda s, b, tok_ref: (0, 0))  # whole table, once
        scratch = [pltpu.VMEM((TS, H), jnp.float32)]
        # table may be double-buffered by the pipeline -> budget 2x, plus tiles + slack.
        vmem_limit = 2 * table_bytes + 8 * tile_bytes + (4 << 20)
    else:
        assert V >= TS, "HBM gather path expects vocab >= seq tile"
        kernel = _embed_ln_kernel_hbm
        wtab_spec = pl.BlockSpec(memory_space=pl.ANY)                   # stays in HBM
        scratch = [pltpu.VMEM((TS, H), jnp.float32), pltpu.SemaphoreType.DMA]
        vmem_limit = 8 * tile_bytes + (4 << 20)

    grid_spec = pltpu.PrefetchScalarGridSpec(
        num_scalar_prefetch=1,                       # token ids -> SMEM
        grid=grid,
        in_specs=[wtab_spec, pos_spec, gamma_spec, beta_spec],
        out_specs=out_spec,
        scratch_shapes=scratch,
    )

    out = pl.pallas_call(
        kernel,
        out_shape=jax.ShapeDtypeStruct((B, S_pad, H), jnp.float32),
        grid_spec=grid_spec,
        compiler_params=pltpu.CompilerParams(
            dimension_semantics=("parallel", "parallel"),
            vmem_limit_bytes=int(vmem_limit),
        ),
    )(tok, wtab, pos, gamma2, beta2)

    return out[:, :S, :]


def _reference(tokens, word_table, pos_table, gamma, beta):
    S = tokens.shape[1]
    word_emb = word_table[tokens]                    # (B, S, H)
    pos_emb = pos_table[jnp.arange(S)][None, :, :]   # (1, S, H)
    emb = word_emb + pos_emb
    mean = jnp.mean(emb, axis=-1, keepdims=True)
    var = jnp.mean((emb - mean) ** 2, axis=-1, keepdims=True)
    normed = (emb - mean) / jnp.sqrt(var + LN_EPS)
    return normed * gamma + beta


if __name__ == "__main__":
    # Small, deterministic setup consistent with the module's __init__.
    vocab_size = 64
    hidden_size = 32
    max_caption_length = 30
    batch_size = 2
    seq_len = 8

    key = jax.random.PRNGKey(0)
    k_tok, k_word, k_pos = jax.random.split(key, 3)

    tokens = jax.random.randint(k_tok, (batch_size, seq_len), 0, vocab_size,
                                dtype=jnp.int32)
    # nn.Embedding default init ~ N(0, 1); LayerNorm affine: weight=1, bias=0.
    word_table = jax.random.normal(k_word, (vocab_size, hidden_size),
                                   dtype=jnp.float32)
    pos_table = jax.random.normal(k_pos, (max_caption_length, hidden_size),
                                  dtype=jnp.float32)
    gamma = jnp.ones((hidden_size,), dtype=jnp.float32)
    beta = jnp.zeros((hidden_size,), dtype=jnp.float32)

    ref = _reference(tokens, word_table, pos_table, gamma, beta)

    # Fast path: word table resident in VMEM (demo table is 8 KiB).
    out_resident = jax.block_until_ready(
        word_and_positional_embedding(tokens, word_table, pos_table, gamma, beta))
    assert out_resident.shape == (batch_size, seq_len, hidden_size)
    assert jnp.allclose(out_resident, ref, atol=1e-5, rtol=1e-5), \
        "resident-path mismatch vs reference"

    # Fallback path: word table stays in HBM, rows gathered by DMA + one aggregate wait.
    out_hbm = jax.block_until_ready(
        word_and_positional_embedding(tokens, word_table, pos_table, gamma, beta,
                                      resident_table_max_bytes=0))
    assert jnp.allclose(out_hbm, ref, atol=1e-5, rtol=1e-5), \
        "HBM-gather-path mismatch vs reference"

    print("KERNEL_OK")
</pallas_src>

<mosaic_0001>
module attributes {stable_mosaic.version = 11 : i64} {
  func.func @_embed_ln_kernel_resident(%arg0: i32, %arg1: i32, %arg2: memref<2x8xi32, #tpu.memory_space<smem>>, %arg3: memref<64x32xf32, #tpu.memory_space<vmem>>, %arg4: memref<8x32xf32, #tpu.memory_space<vmem>>, %arg5: memref<1x32xf32, #tpu.memory_space<vmem>>, %arg6: memref<1x32xf32, #tpu.memory_space<vmem>>, %arg7: memref<1x8x32xf32, #tpu.memory_space<vmem>>, %arg8: memref<8x32xf32, #tpu.memory_space<vmem>>) attributes {dimension_semantics = [#tpu.dimension_semantics<parallel>, #tpu.dimension_semantics<parallel>], iteration_bounds = array<i64: 1, 2>, scalar_prefetch = 1 : i64, scratch_operands = 1 : i64, tpu.core_type = #tpu.core_type<tc>, window_params = [{pipeline_mode = #tpu.pipeline_mode<synchronous>, transform_indices = @transform_0, window_bounds = array<i64: 64, 32>}, {transform_indices = @transform_1, window_bounds = array<i64: 8, 32>}, {pipeline_mode = #tpu.pipeline_mode<synchronous>, transform_indices = @transform_2, window_bounds = array<i64: 1, 32>}, {pipeline_mode = #tpu.pipeline_mode<synchronous>, transform_indices = @transform_3, window_bounds = array<i64: 1, 32>}, {transform_indices = @transform_4, window_bounds = array<i64: 1, 8, 32>}]} {
    %c8_i32 = arith.constant 8 : i32
    %0 = arith.muli %arg0, %c8_i32 : i32
    %c0_i32 = arith.constant 0 : i32
    %1 = arith.addi %0, %c0_i32 : i32
    %2 = arith.index_cast %arg1 : i32 to index
    %3 = arith.index_cast %1 : i32 to index
    %4 = memref.load %arg2[%2, %3] : memref<2x8xi32, #tpu.memory_space<smem>>
    %c0_i32_0 = arith.constant 0 : i32
    %c63_i32 = arith.constant 63 : i32
    %5 = arith.maxsi %c0_i32_0, %4 : i32
    %6 = arith.minsi %c63_i32, %5 : i32
    %7 = arith.index_cast %6 : i32 to index
    %c0 = arith.constant 0 : index
    %8 = vector.load %arg3[%7, %c0] : memref<64x32xf32, #tpu.memory_space<vmem>>, vector<1x32xf32>
    %9 = arith.index_cast %c0_i32 : i32 to index
    %c0_1 = arith.constant 0 : index
    %10 = vector.load %arg8[%9, %c0_1] : memref<8x32xf32, #tpu.memory_space<vmem>>, vector<1x32xf32>
    tpu.vector_store %arg8[%9, %c0_1], %8 {strides = array<i32>} : memref<8x32xf32, #tpu.memory_space<vmem>>, vector<1x32xf32>,
    %c1_i32 = arith.constant 1 : i32
    %11 = arith.addi %0, %c1_i32 : i32
    %12 = arith.index_cast %arg1 : i32 to index
    %13 = arith.index_cast %11 : i32 to index
    %14 = memref.load %arg2[%12, %13] : memref<2x8xi32, #tpu.memory_space<smem>>
    %c0_i32_2 = arith.constant 0 : i32
    %c63_i32_3 = arith.constant 63 : i32
    %15 = arith.maxsi %c0_i32_2, %14 : i32
    %16 = arith.minsi %c63_i32_3, %15 : i32
    %17 = arith.index_cast %16 : i32 to index
    %c0_4 = arith.constant 0 : index
    %18 = vector.load %arg3[%17, %c0_4] : memref<64x32xf32, #tpu.memory_space<vmem>>, vector<1x32xf32>
    %19 = arith.index_cast %c1_i32 : i32 to index
    %c0_5 = arith.constant 0 : index
    %20 = vector.load %arg8[%19, %c0_5] : memref<8x32xf32, #tpu.memory_space<vmem>>, vector<1x32xf32>
    tpu.vector_store %arg8[%19, %c0_5], %18 {strides = array<i32>} : memref<8x32xf32, #tpu.memory_space<vmem>>, vector<1x32xf32>,
    %c2_i32 = arith.constant 2 : i32
    %21 = arith.addi %0, %c2_i32 : i32
    %22 = arith.index_cast %arg1 : i32 to index
    %23 = arith.index_cast %21 : i32 to index
    %24 = memref.load %arg2[%22, %23] : memref<2x8xi32, #tpu.memory_space<smem>>
    %c0_i32_6 = arith.constant 0 : i32
    %c63_i32_7 = arith.constant 63 : i32
    %25 = arith.maxsi %c0_i32_6, %24 : i32
    %26 = arith.minsi %c63_i32_7, %25 : i32
    %27 = arith.index_cast %26 : i32 to index
    %c0_8 = arith.constant 0 : index
    %28 = vector.load %arg3[%27, %c0_8] : memref<64x32xf32, #tpu.memory_space<vmem>>, vector<1x32xf32>
    %29 = arith.index_cast %c2_i32 : i32 to index
    %c0_9 = arith.constant 0 : index
    %30 = vector.load %arg8[%29, %c0_9] : memref<8x32xf32, #tpu.memory_space<vmem>>, vector<1x32xf32>
    tpu.vector_store %arg8[%29, %c0_9], %28 {strides = array<i32>} : memref<8x32xf32, #tpu.memory_space<vmem>>, vector<1x32xf32>,
    %c3_i32 = arith.constant 3 : i32
    %31 = arith.addi %0, %c3_i32 : i32
    %32 = arith.index_cast %arg1 : i32 to index
    %33 = arith.index_cast %31 : i32 to index
    %34 = memref.load %arg2[%32, %33] : memref<2x8xi32, #tpu.memory_space<smem>>
    %c0_i32_10 = arith.constant 0 : i32
    %c63_i32_11 = arith.constant 63 : i32
    %35 = arith.maxsi %c0_i32_10, %34 : i32
    %36 = arith.minsi %c63_i32_11, %35 : i32
    %37 = arith.index_cast %36 : i32 to index
    %c0_12 = arith.constant 0 : index
    %38 = vector.load %arg3[%37, %c0_12] : memref<64x32xf32, #tpu.memory_space<vmem>>, vector<1x32xf32>
    %39 = arith.index_cast %c3_i32 : i32 to index
    %c0_13 = arith.constant 0 : index
    %40 = vector.load %arg8[%39, %c0_13] : memref<8x32xf32, #tpu.memory_space<vmem>>, vector<1x32xf32>
    tpu.vector_store %arg8[%39, %c0_13], %38 {strides = array<i32>} : memref<8x32xf32, #tpu.memory_space<vmem>>, vector<1x32xf32>,
    %c4_i32 = arith.constant 4 : i32
    %41 = arith.addi %0, %c4_i32 : i32
    %42 = arith.index_cast %arg1 : i32 to index
    %43 = arith.index_cast %41 : i32 to index
    %44 = memref.load %arg2[%42, %43] : memref<2x8xi32, #tpu.memory_space<smem>>
    %c0_i32_14 = arith.constant 0 : i32
    %c63_i32_15 = arith.constant 63 : i32
    %45 = arith.maxsi %c0_i32_14, %44 : i32
    %46 = arith.minsi %c63_i32_15, %45 : i32
    %47 = arith.index_cast %46 : i32 to index
    %c0_16 = arith.constant 0 : index
    %48 = vector.load %arg3[%47, %c0_16] : memref<64x32xf32, #tpu.memory_space<vmem>>, vector<1x32xf32>
    %49 = arith.index_cast %c4_i32 : i32 to index
    %c0_17 = arith.constant 0 : index
    %50 = vector.load %arg8[%49, %c0_17] : memref<8x32xf32, #tpu.memory_space<vmem>>, vector<1x32xf32>
    tpu.vector_store %arg8[%49, %c0_17], %48 {strides = array<i32>} : memref<8x32xf32, #tpu.memory_space<vmem>>, vector<1x32xf32>,
    %c5_i32 = arith.constant 5 : i32
    %51 = arith.addi %0, %c5_i32 : i32
    %52 = arith.index_cast %arg1 : i32 to index
    %53 = arith.index_cast %51 : i32 to index
    %54 = memref.load %arg2[%52, %53] : memref<2x8xi32, #tpu.memory_space<smem>>
    %c0_i32_18 = arith.constant 0 : i32
    %c63_i32_19 = arith.constant 63 : i32
    %55 = arith.maxsi %c0_i32_18, %54 : i32
    %56 = arith.minsi %c63_i32_19, %55 : i32
    %57 = arith.index_cast %56 : i32 to index
    %c0_20 = arith.constant 0 : index
    %58 = vector.load %arg3[%57, %c0_20] : memref<64x32xf32, #tpu.memory_space<vmem>>, vector<1x32xf32>
    %59 = arith.index_cast %c5_i32 : i32 to index
    %c0_21 = arith.constant 0 : index
    %60 = vector.load %arg8[%59, %c0_21] : memref<8x32xf32, #tpu.memory_space<vmem>>, vector<1x32xf32>
    tpu.vector_store %arg8[%59, %c0_21], %58 {strides = array<i32>} : memref<8x32xf32, #tpu.memory_space<vmem>>, vector<1x32xf32>,
    %c6_i32 = arith.constant 6 : i32
    %61 = arith.addi %0, %c6_i32 : i32
    %62 = arith.index_cast %arg1 : i32 to index
    %63 = arith.index_cast %61 : i32 to index
    %64 = memref.load %arg2[%62, %63] : memref<2x8xi32, #tpu.memory_space<smem>>
    %c0_i32_22 = arith.constant 0 : i32
    %c63_i32_23 = arith.constant 63 : i32
    %65 = arith.maxsi %c0_i32_22, %64 : i32
    %66 = arith.minsi %c63_i32_23, %65 : i32
    %67 = arith.index_cast %66 : i32 to index
    %c0_24 = arith.constant 0 : index
    %68 = vector.load %arg3[%67, %c0_24] : memref<64x32xf32, #tpu.memory_space<vmem>>, vector<1x32xf32>
    %69 = arith.index_cast %c6_i32 : i32 to index
    %c0_25 = arith.constant 0 : index
    %70 = vector.load %arg8[%69, %c0_25] : memref<8x32xf32, #tpu.memory_space<vmem>>, vector<1x32xf32>
    tpu.vector_store %arg8[%69, %c0_25], %68 {strides = array<i32>} : memref<8x32xf32, #tpu.memory_space<vmem>>, vector<1x32xf32>,
    %c7_i32 = arith.constant 7 : i32
    %71 = arith.addi %0, %c7_i32 : i32
    %72 = arith.index_cast %arg1 : i32 to index
    %73 = arith.index_cast %71 : i32 to index
    %74 = memref.load %arg2[%72, %73] : memref<2x8xi32, #tpu.memory_space<smem>>
    %c0_i32_26 = arith.constant 0 : i32
    %c63_i32_27 = arith.constant 63 : i32
    %75 = arith.maxsi %c0_i32_26, %74 : i32
    %76 = arith.minsi %c63_i32_27, %75 : i32
    %77 = arith.index_cast %76 : i32 to index
    %c0_28 = arith.constant 0 : index
    %78 = vector.load %arg3[%77, %c0_28] : memref<64x32xf32, #tpu.memory_space<vmem>>, vector<1x32xf32>
    %79 = arith.index_cast %c7_i32 : i32 to index
    %c0_29 = arith.constant 0 : index
    %80 = vector.load %arg8[%79, %c0_29] : memref<8x32xf32, #tpu.memory_space<vmem>>, vector<1x32xf32>
    tpu.vector_store %arg8[%79, %c0_29], %78 {strides = array<i32>} : memref<8x32xf32, #tpu.memory_space<vmem>>, vector<1x32xf32>,
    %c8_i32_30 = arith.constant 8 : i32
    %c0_31 = arith.constant 0 : index
    %c0_32 = arith.constant 0 : index
    %81 = vector.load %arg8[%c0_31, %c0_32] : memref<8x32xf32, #tpu.memory_space<vmem>>, vector<8x32xf32>
    %c0_33 = arith.constant 0 : index
    %c0_34 = arith.constant 0 : index
    %82 = vector.load %arg4[%c0_33, %c0_34] : memref<8x32xf32, #tpu.memory_space<vmem>>, vector<8x32xf32>
    %83 = arith.addf %81, %82 : vector<8x32xf32>
    %cst = arith.constant dense<0.000000e+00> : vector<8xf32>
    %84 = vector.multi_reduction <add>, %83, %cst [1] : vector<8x32xf32> to vector<8xf32>
    %85 = vector.shape_cast %84 : vector<8xf32> to vector<8x1xf32>
    %cst_35 = arith.constant 3.200000e+01 : f32
    %86 = vector.broadcast %cst_35 : f32 to vector<8x1xf32>
    %87 = arith.divf %85, %86 : vector<8x1xf32>
    %88 = vector.broadcast %87 : vector<8x1xf32> to vector<8x32xf32>
    %89 = arith.subf %83, %88 : vector<8x32xf32>
    %90 = arith.mulf %89, %89 : vector<8x32xf32>
    %cst_36 = arith.constant dense<0.000000e+00> : vector<8xf32>
    %91 = vector.multi_reduction <add>, %90, %cst_36 [1] : vector<8x32xf32> to vector<8xf32>
    %92 = vector.shape_cast %91 : vector<8xf32> to vector<8x1xf32>
    %cst_37 = arith.constant 3.200000e+01 : f32
    %93 = vector.broadcast %cst_37 : f32 to vector<8x1xf32>
    %94 = arith.divf %92, %93 : vector<8x1xf32>
    %cst_38 = arith.constant 9.99999993E-9 : f32
    %95 = vector.broadcast %cst_38 : f32 to vector<8x1xf32>
    %96 = arith.addf %94, %95 : vector<8x1xf32>
    %97 = math.rsqrt %96 : vector<8x1xf32>
    %98 = vector.broadcast %97 : vector<8x1xf32> to vector<8x32xf32>
    %99 = arith.mulf %89, %98 : vector<8x32xf32>
    %c0_39 = arith.constant 0 : index
    %c0_40 = arith.constant 0 : index
    %100 = vector.load %arg5[%c0_39, %c0_40] : memref<1x32xf32, #tpu.memory_space<vmem>>, vector<1x32xf32>
    %101 = vector.broadcast %100 : vector<1x32xf32> to vector<8x32xf32>
    %102 = arith.mulf %99, %101 : vector<8x32xf32>
    %c0_41 = arith.constant 0 : index
    %c0_42 = arith.constant 0 : index
    %103 = vector.load %arg6[%c0_41, %c0_42] : memref<1x32xf32, #tpu.memory_space<vmem>>, vector<1x32xf32>
    %104 = vector.broadcast %103 : vector<1x32xf32> to vector<8x32xf32>
    %105 = arith.addf %102, %104 : vector<8x32xf32>
    %c0_43 = arith.constant 0 : index
    %c0_44 = arith.constant 0 : index
    %c0_45 = arith.constant 0 : index
    %106 = vector.load %arg7[%c0_43, %c0_44, %c0_45] : memref<1x8x32xf32, #tpu.memory_space<vmem>>, vector<1x8x32xf32>
    %107 = vector.shape_cast %106 : vector<1x8x32xf32> to vector<8x32xf32>
    %108 = vector.shape_cast %105 : vector<8x32xf32> to vector<1x8x32xf32>
    tpu.vector_store %arg7[%c0_43, %c0_44, %c0_45], %108 {strides = array<i32>} : memref<1x8x32xf32, #tpu.memory_space<vmem>>, vector<1x8x32xf32>,
    return
  }
  func.func @transform_0(%arg0: i32, %arg1: i32, %arg2: memref<2x8xi32, #tpu.memory_space<smem>>) -> (i32, i32) {
    %c0_i32 = arith.constant 0 : i32
    %c0_i32_0 = arith.constant 0 : i32
    %c0_i32_1 = arith.constant 0 : i32
    return %c0_i32, %c0_i32_0 : i32, i32
  }
  func.func @transform_1(%arg0: i32, %arg1: i32, %arg2: memref<2x8xi32, #tpu.memory_space<smem>>) -> (i32, i32) {
    %c0_i32 = arith.constant 0 : i32
    %c0_i32_0 = arith.constant 0 : i32
    return %arg0, %c0_i32 : i32, i32
  }
  func.func @transform_2(%arg0: i32, %arg1: i32, %arg2: memref<2x8xi32, #tpu.memory_space<smem>>) -> (i32, i32) {
    %c0_i32 = arith.constant 0 : i32
    %c0_i32_0 = arith.constant 0 : i32
    %c0_i32_1 = arith.constant 0 : i32
    return %c0_i32, %c0_i32_0 : i32, i32
  }
  func.func @transform_3(%arg0: i32, %arg1: i32, %arg2: memref<2x8xi32, #tpu.memory_space<smem>>) -> (i32, i32) {
    %c0_i32 = arith.constant 0 : i32
    %c0_i32_0 = arith.constant 0 : i32
    %c0_i32_1 = arith.constant 0 : i32
    return %c0_i32, %c0_i32_0 : i32, i32
  }
  func.func @transform_4(%arg0: i32, %arg1: i32, %arg2: memref<2x8xi32, #tpu.memory_space<smem>>) -> (i32, i32, i32) {
    %c0_i32 = arith.constant 0 : i32
    %c0_i32_0 = arith.constant 0 : i32
    return %arg1, %arg0, %c0_i32 : i32, i32, i32
  }
}

</mosaic_0001>

<bundles_post_ra>
// kernel: tpu_custom_call.1
= control target key start
LH: loop header
LB: loop body
LE: loop exit
PB: predicated region body
PF: predicated region fallthrough
CT: control target
= control target key end

     0   :  { %s911_s0 = inlined_call_operand.vmem [shape: s32[2,8], index: 0, kind: input, shape index: {}]   ;;  %s912_s1 = inlined_call_operand.vmem [shape: f32[64,32], index: 1, kind: input, shape index: {}]   ;;  %s913_s2 = inlined_call_operand.vmem [shape: f32[8,32], index: 2, kind: input, shape index: {}]   ;;  %s914_s3 = inlined_call_operand.vmem [shape: f32[1,32], index: 3, kind: input, shape index: {}]   ;;  %s915_s4 = inlined_call_operand.vmem [shape: f32[1,32], index: 4, kind: input, shape index: {}]   ;;  %s916_s5 = inlined_call_operand.hbm [shape: f32[2,8,32], index: 5, kind: output, shape index: {}]  }
   0x1   :  { %s10_s20 = sshll.u32 %s911_s0, 4  ;;  %s11_s20 = int_to_ptr.vmem [resolvable:$true] %s10_s20 }
   0x2   :  { %s606_s21 = scalar_lea.vmem %s11_s20, 32  ;;  %p611_p1 = scmp.lt.s32.totalorder %s11_s20, %s11_s20 }
   0x3   :  { %p607_p0 = scmp.ne.s32.totalorder %s11_s20, %s606_s21  ;;  %p612_p2 = scmp.lt.s32.totalorder %s606_s21, %s606_s21 }
   0x5   :  { %p613_p3 = por %p612_p2, %p611_p1 }
   0x7   :  { %p614_p4 = pnand %p613_p3, %p607_p0 }
   0x9   :  { %617 = shalt.err (!%p614_p4)  }
   0xa   :  { %s700_s22 = smov [#allocation4]  }
   0xb   :  { %13 = dma.vmem_to_smem %s11_s20, 32, %s700_s22, [#allocation3] }
   0xc   :  { %670 = dma.done.wait [#allocation3], 32 }
   0xd   :  { %671 = vsyncadd [#allocation3], 4294967264 }
   0xe   :  { %15 = sfence }
   0xf   :  { %16 = vsyncpa [#allocation6], 0 }
  0x10   :  { %18 = vsyncpa [#allocation6 + $0x1], 0  ;;  %s735_s23 = smov 0   ;;  %s737_s24 = smov 0  }
  0x11   :  { %s739_s0 = smov 0   ;;  %s741_s25 = smov 0  }
  0x12   :  { %s743_s26 = smov 0   ;;  %s745_s27 = smov 0  }
  0x13 LB: > { %s472_s28 = sadd.s32 4294967295, %s698_s27   ;;  %s473_s29 = sadd.s32 4294967294, %s698_s27   ;;  %s698_s27 = sphi %s745_s27, %s24_s27   ;;  %s694_s26 = sphi %s743_s26, %s923_s26   ;;  %s690_s25 = sphi %s741_s25, %s922_s25   ;;  %s686_s0 = sphi %s739_s0, %s921_s0   ;;  %s682_s24 = sphi %s737_s24, %s920_s24   ;;  %s678_s23 = sphi %s735_s23, %s919_s23  }
  0x14   : > { %s33_s30 = sadd.s32 1, %s694_s26  ;;  %s134_s6 = sadd.s32 1, %s686_s0 }
  0x15   : > { %p34_p5 = scmp.ge.s32.totalorder %s33_s30, 2  ;;  %p144_p6 = scmp.ne.s32.totalorder %s686_s0, %s682_s24 }
  0x16   : > { %p145_p7 = scmp.eq.s32.totalorder %s472_s28, 1  ;;  %p150_p8 = scmp.ne.s32.totalorder %s682_s24, %s678_s23 }
  0x17   : > { %s925_s30 = smov (%p34_p5, %s33_s30), 0  ;;  %p151_p10 = scmp.eq.s32.totalorder %s473_s29, 1 }
  0x18   : > { %p773_p9 = por %p145_p7, %p144_p6  ;;  %s129_s8 = ssub.s32 %s694_s26, %s925_s30 }
  0x19   : > { %p476_p11 = scmp.ge.s32.totalorder %s698_s27, 1  ;;  %p132_p12 = scmp.eq.s32.totalorder %s129_s8, 0 }
  0x1a   : > { %p780_p13 = por %p151_p10, %p150_p8  ;;  %p185_p0 = scmp.lt.s32.totalorder %s698_s27, 3 }
  0x1b   : > { %s786_s10 = scalar_select %p132_p12, %s686_s0, %s134_s6  }
  0x1c   : > { %p186_p1 = pnand %p476_p11, %p185_p0 }
  0x1d   : > { %s788_s11 = sshll.u32 (!%p186_p1), %s690_s25, 7  ;;  %vm229_vm0 = vcmask (!%p186_p1), 253952   ;;  %v344_v8 = vld [vmem:[%s913_s2] sm:$0xff] (!%p186_p1)  ;;  %vm346_vm1 = vcmask (!%p186_p1), 261120  }
  0x1e   : > { %189 = sbr.rel (%p186_p1) target bundleno = 401 (0x191), region = 36  ;;  %s222_s12 = sld [smem:[#allocation4 + %s788_s11]] (!%p186_p1)  ;;  %v526_v21 = vld [vmem:[%s914_s3] ss:$0 sm:$0xff] (!%p186_p1) }
  0x1f   : > { %s238_s13 = sadd.s32 (!%p186_p1), 1, %s788_s11  ;;  %s254_s15 = sadd.s32 (!%p186_p1), 2, %s788_s11  ;;  %v527_v23 = vld [vmem:[%s915_s4] ss:$0 sm:$0xff] (!%p186_p1) }
  0x20   : > { %s239_s14 = sld [smem:[#allocation4 + %s238_s13]] (!%p186_p1)  ;;  %s270_s17 = sadd.s32 (!%p186_p1), 3, %s788_s11 }
  0x21   : > { %s255_s16 = sld [smem:[#allocation4 + %s254_s15]] (!%p186_p1)  ;;  %s286_s19 = sadd.s32 (!%p186_p1), 4, %s788_s11 }
  0x22   : > { %s794_s18 = sld [smem:[#allocation4 + %s270_s17]] (!%p186_p1)  ;;  %s302_s21 = sadd.s32 (!%p186_p1), 5, %s788_s11 }
  0x23   : > { %s797_s20 = sld [smem:[#allocation4 + %s286_s19]] (!%p186_p1)  ;;  %s318_s25 = sadd.s32 (!%p186_p1), 6, %s788_s11 }
  0x24   : > { %s800_s22 = sld [smem:[#allocation4 + %s302_s21]] (!%p186_p1)  ;;  %p223_p2 = scmp.gt.s32.totalorder (!%p186_p1), %s222_s12, 0 }
  0x25   : > { %p479_p3 = scmp.lt.s32.totalorder %s222_s12, 63  ;;  %s319_s13 = sld [smem:[#allocation4 + %s318_s25]] }
  0x26   : > { %p240_p4 = scmp.gt.s32.totalorder %s239_s14, 0  ;;  %p485_p5 = scmp.lt.s32.totalorder %s239_s14, 63 }
  0x27   : > { %s927_s12 = smov (!%p223_p2, %s222_s12), 0  ;;  %p256_p6 = scmp.gt.s32.totalorder %s255_s16, 0 }
  0x28   : > { %s929_s14 = smov (!%p240_p4, %s239_s14), 0  ;;  %s931_s12 = smov (!%p479_p3, %s927_s12), 63 }
  0x29   : > { %s933_s14 = smov (!%p485_p5, %s929_s14), 63  ;;  %s227_s6 = scalar_lea.vmem %s912_s1, %s931_s12 }
  0x2a   : > { %v228_v0 = vld [vmem:[%s227_s6] sm:$0x1]  ;;  %s244_s15 = scalar_lea.vmem %s912_s1, %s933_s14  ;;  %p491_p7 = scmp.lt.s32.totalorder %s255_s16, 63 }
  0x2b   : > { %230 = vst.msk [vmem:[#allocation2] sm:$0x1] %vm229_vm0, %v228_v0  ;;  %v245_v1 = vld [vmem:[%s244_s15] sm:$0x1]  ;;  %s935_s16 = smov (!%p256_p6, %s255_s16), 0  ;;  %p272_p8 = scmp.gt.s32.totalorder %s794_s18, 0 }
  0x2c   : > { %246 = vst.msk [vmem:[#allocation2 + $0x1] sm:$0x1] %vm229_vm0, %v245_v1  ;;  %p497_p10 = scmp.lt.s32.totalorder %s794_s18, 63  ;;  %s937_s16 = smov (!%p491_p7, %s935_s16), 63 }
  0x2d   : > { %s939_s18 = smov (!%p272_p8, %s794_s18), 0  ;;  %s260_s14 = scalar_lea.vmem %s912_s1, %s937_s16 }
  0x2e   : > { %p288_p11 = scmp.gt.s32.totalorder %s797_s20, 0  ;;  %v261_v2 = vld [vmem:[%s260_s14] sm:$0x1]  ;;  %s941_s18 = smov (!%p497_p10, %s939_s18), 63 }
  0x2f   : > { %262 = vst.msk [vmem:[#allocation2 + $0x2] sm:$0x1] %vm229_vm0, %v261_v2  ;;  %s276_s29 = scalar_lea.vmem %s912_s1, %s941_s18  ;;  %p503_p12 = scmp.lt.s32.totalorder %s797_s20, 63 }
  0x30   : > { %s289_s19 = scalar_select %p288_p11, %s797_s20, 0  ;;  %v277_v3 = vld [vmem:[%s276_s29] sm:$0x1] }
  0x31   : > { %p304_p0 = scmp.gt.s32.totalorder %s800_s22, 0  ;;  %p509_p1 = scmp.lt.s32.totalorder %s800_s22, 63  ;;  %278 = vst.msk [vmem:[#allocation2 + $0x3] sm:$0x1] %vm229_vm0, %v277_v3 }
  0x32   : > { %s943_s19 = smov (!%p503_p12, %s289_s19), 63  ;;  %s334_s15 = sadd.s32 7, %s788_s11 }
  0x33   : > { %s945_s22 = smov (!%p304_p0, %s800_s22), 0  ;;  %s292_s8 = scalar_lea.vmem %s912_s1, %s943_s19 }
  0x34   : > { %v293_v4 = vld [vmem:[%s292_s8] sm:$0x1]  ;;  %s947_s22 = smov (!%p509_p1, %s945_s22), 63  ;;  %s335_s17 = sld [smem:[#allocation4 + %s334_s15]] }
  0x35   : > { %294 = vst.msk [vmem:[#allocation2 + $0x4] sm:$0x1] %vm229_vm0, %v293_v4  ;;  %s308_s12 = scalar_lea.vmem %s912_s1, %s947_s22  ;;  %p320_p2 = scmp.gt.s32.totalorder %s319_s13, 0 }
  0x36   : > { %v309_v5 = vld [vmem:[%s308_s12] sm:$0x1]  ;;  %p515_p3 = scmp.lt.s32.totalorder %s319_s13, 63  ;;  %s207_s6 = sand.u32 1, %s682_s24  }
  0x37   : > { %310 = vst.msk [vmem:[#allocation2 + $0x5] sm:$0x1] %vm229_vm0, %v309_v5  ;;  %s949_s13 = smov (!%p320_p2, %s319_s13), 0  ;;  %s477_s8 = sshll.u32 %s207_s6, 3 }
  0x38   : > { %s951_s13 = smov (!%p515_p3, %s949_s13), 63  ;;  %s209_s12 = scalar_lea.vmem [#allocation5], %s477_s8 }
  0x39   : > { %s324_s19 = scalar_lea.vmem %s912_s1, %s951_s13  ;;  %s379_s22 = scalar_lea.sflag [#allocation6], %s207_s6 }
  0x3a   : > { %p336_p4 = scmp.gt.s32.totalorder %s335_s17, 0  ;;  %p521_p5 = scmp.lt.s32.totalorder %s335_s17, 63  ;;  %v325_v6 = vld [vmem:[%s324_s19] sm:$0x1] }
  0x3b   : > { %326 = vst.msk [vmem:[#allocation2 + $0x6] sm:$0x1] %vm229_vm0, %v325_v6  ;;  %s863_s19 = scalar_lea.hbm %s916_s5, %s788_s11 }
  0x3c   : > { %s953_s17 = smov (!%p336_p4, %s335_s17), 0 }
  0x3d   : > { %s955_s17 = smov (!%p521_p5, %s953_s17), 63 }
  0x3e   : > { %s340_s28 = scalar_lea.vmem %s912_s1, %s955_s17  ;;  %s393_s17 = sshll.u32 %s209_s12, 4  ;;  %s865_s17 = int_to_ptr.vmem [resolvable:$true] %s393_s17 }
  0x3f   : > { %v341_v7 = vld [vmem:[%s340_s28] sm:$0x1]  ;;  %s618_s21 = scalar_lea.vmem %s865_s17, 128  ;;  %s701_s28 = smov [#allocation5]  }
  0x40   : > { %342 = vst.msk [vmem:[#allocation2 + $0x7] sm:$0x1] %vm229_vm0, %v341_v7  ;;  %p619_p6 = scmp.ne.s32.totalorder %s865_s17, %s618_s21  ;;  %s622_s29 = sshll.u32 %s701_s28, 4  ;;  %s623_s29 = int_to_ptr.vmem [resolvable:$false] %s622_s29 }
  0x41   : > { %s624_s16 = scalar_lea.vmem %s623_s29, 256  ;;  %p625_p10 = scmp.lt.s32.totalorder %s865_s17, %s623_s29 }
  0x42   : > { %p620_p7 = pnand %p619_p6, %p773_p9  ;;  %p626_p11 = scmp.lt.s32.totalorder %s624_s16, %s618_s21 }
  0x44   : > { %p621_p8 = pneg %p620_p7  ;;  %p627_p12 = por %p626_p11, %p625_p10 }
  0x46   : > { %p628_p0 = pnand %p627_p12, %p621_p8 }
  0x47   : > { %v343_v9 = vld [vmem:[#allocation2] sm:$0xff] }
  0x48   : > { %v345_v10 = vadd.f32 %v344_v8, %v343_v9 }
  0x4a   : > { %v347_v11 = vsel %vm346_vm1, %v345_v10, 0.0 }
  0x4b   : > { %348 = vadd.xlane.f32.xlu0 %v347_v11 }
  0xd8   : > { %v349_v12 = vpop.xlane.xlu0 %348 }
  0xd9   : > { %v351_v13 = vmul.f32 0.03125, %v349_v12 }
  0xdb   : > { %v352_v14 = vsub.f32 %v345_v10, %v351_v13 }
  0xdd   : > { %v353_v15 = vmul.f32 %v352_v14, %v352_v14 }
  0xdf   : > { %v354_v16 = vsel %vm346_vm1, %v353_v15, 0.0 }
  0xe0   : > { %355 = vadd.xlane.f32.xlu0 %v354_v16 }
 0x16d   : > { %v356_v17 = vpop.xlane.xlu0 %355 }
 0x16e   : > { %v357_v18 = vmul.f32 0.03125, %v356_v17 }
 0x170   : > { %v358_v19 = vadd.f32 1e-08, %v357_v18 }
 0x172   : > { %604 = vrsqrt.f32 %v358_v19 }
 0x17c   : > { %v605_v20 = vpop.eup %604 }
 0x17d   : > { %v360_v22 = vmul.f32 %v605_v20, %v352_v14 }
 0x17f   : > { %v368_v24 = vmul.f32 %v526_v21, %v360_v22 }
 0x181   : > { %v376_v25 = vadd.f32 %v527_v23, %v368_v24 }
 0x183   : > { %377 = vst.msk [vmem:[%s209_s12] sm:$0xff] %vm346_vm1, %v376_v25 }
 0x184   : > { %631 = shalt.err (!%p628_p0)
}
 0x185   : > { %s632_s11 = scalar_lea.hbm %s863_s19, 128  ;;  %s636_s13 = scalar_lea.hbm %s916_s5, 256 }
 0x186   : > { %p633_p1 = scmp.ne.s32.totalorder %s863_s19, %s632_s11  ;;  %p637_p4 = scmp.lt.u32.totalorder %s863_s19, %s916_s5 }
 0x187   : > { %p638_p5 = scmp.lt.u32.totalorder %s636_s13, %s632_s11  ;;  %p640_p7 = scmp.lt.u32.totalorder %s632_s11, %s863_s19 }
 0x188   : > { %p634_p2 = pnand %p633_p1, %p773_p9 }
 0x189   : > { %p639_p6 = por %p638_p5, %p637_p4 }
 0x18a   : > { %p635_p3 = pneg %p634_p2 }
 0x18b   : > { %p641_p8 = por %p640_p7, %p639_p6 }
 0x18d   : > { %p642_p10 = pnand %p641_p8, %p635_p3 }
 0x18f   : > { %645 = shalt.err (!%p642_p10)
}
 0x190   : > { %548 = dma.vmem_to_hbm [thread:$0]  (%p773_p9), %s865_s17, 128, %s863_s19, %s379_s22  }
 0x191 PF: > { %p554_p11 = scmp.ge.s32.totalorder %s698_s27, 2  ;;  %s405_s20 = sand.u32 1, %s678_s23  }
 0x192   : > { %s406_s12 = scalar_lea.sflag [#allocation6], %s405_s20 }
 0x193   : > { %p551_p12 = pnand %p554_p11, %p780_p13 }
 0x195   : > { %673 = dma.done.wait (!%p551_p12), %s406_s12, 128  }
 0x196   : > { %675 = vsyncadd (!%p551_p12), %s406_s12, 4294967168  ;;  %s24_s27 = sadd.s32 1, %s698_s27   ;;  %s919_s23 = smov %s682_s24 }
 0x197   : > { %p21_p0 = scmp.ge.s32.totalorder %s24_s27, 4   ;;  %s920_s24 = smov %s686_s0 }
 0x198   : > { %s921_s0 = smov %s786_s10  ;;  %s922_s25 = smov %s694_s26 }
 0x199   : > { %s923_s26 = smov %s925_s30  ;;  %23 = sbr.rel (!%p21_p0) target bundleno = 19 (0x13), region = 79 }
 0x1a0   :  { %411 = vsyncpa [#allocation6], 1 }
 0x1a1   :  { %413 = vsyncpa [#allocation6 + $0x1], 1 }

</bundles_post_ra>
